<compile_context>
chip_gen: v7x
topology: tpu7x:2x2x1
jax: 0.10.0
libtpu: 0.0.40
codegen_flags: <defaults>
</compile_context>

<pallas_src>
import functools

import numpy as np
import jax
import jax.numpy as jnp
from jax.experimental import pallas as pl
from jax.experimental.pallas import tpu as pltpu

_LANE = 128
_MAX_BLOCK_ROWS = 256   # (256, 128) f32 tile = 128 KiB per buffer -> safe on v5e/v6e/v7x


# ----------------------------------------------------------------------------
# SPU and its derivative (elementwise, branchless).
# ----------------------------------------------------------------------------
def _spu(x):
    sig_negx = 1.0 / (1.0 + jnp.exp(x))           # sigmoid(-x); exp(x) only large for x>=0 branch (discarded)
    return jnp.where(x >= 0.0, x * x - 0.5, sig_negx - 1.0)


def _dspu(x):
    sig_negx = 1.0 / (1.0 + jnp.exp(x))
    return jnp.where(x >= 0.0, 2.0 * x, -sig_negx * (1.0 - sig_negx))


# ----------------------------------------------------------------------------
# Branchless translation of SPUTransformer.forward (per-element math).
# Used both inside the Pallas kernel and as the plain-JAX reference.
# ----------------------------------------------------------------------------
def _spu_transform_math(l, u, box):
    zeros = jnp.zeros_like(l)
    vs_l = _spu(l)
    vs_u = _spu(u)
    diff = u - l
    neg = u < 0.0
    pos = l >= 0.0
    cross = jnp.logical_not(jnp.logical_or(neg, pos))
    all_slope = (vs_u - vs_l) / diff

    slope_l = zeros
    slope_u = zeros
    u_mod = u
    vs_u_mod = vs_u

    if not box:
        t_l = _dspu(l)
        t_u = _dspu(u)
        cross_pos = jnp.logical_and(all_slope > 0.0, cross)
        cross_neg = jnp.logical_and(all_slope < 0.0, cross)

        # purely positive / purely negative rows
        slope_u = jnp.where(pos, all_slope, slope_u)
        slope_l = jnp.where(pos, t_l, slope_l)
        slope_l = jnp.where(neg, all_slope, slope_l)
        slope_u = jnp.where(neg, t_l, slope_u)

        cnc = jnp.logical_and(all_slope < t_l, cross_neg)     # chord crosses spu
        cnnc = jnp.logical_and(all_slope >= t_l, cross_neg)   # chord does not cross spu
        cpan = jnp.logical_or(cross_pos, cnnc)

        slope_u = jnp.where(cpan, all_slope, slope_u)
        shifts_temp = jnp.where(cpan, vs_u - all_slope * u, zeros)
        intercept_x = jnp.where(cpan, (-shifts_temp - 0.5) / all_slope, zeros)

        area_t1 = zeros
        area_cut = zeros
        area_t1 = jnp.where(cross_pos, 0.5 * jnp.abs(vs_u + 0.5) * (u - intercept_x), area_t1)
        area_cut = jnp.where(cross_pos, 0.5 * jnp.abs(vs_l + 0.5) * (l - intercept_x), area_cut)
        area_t1 = jnp.where(cnnc, 0.5 * jnp.abs(vs_l + 0.5) * (intercept_x - l), area_t1)
        area_cut = jnp.where(cnnc, 0.5 * jnp.abs(vs_u + 0.5) * (intercept_x - u), area_cut)
        area_t1 = jnp.where(cpan, area_t1 - area_cut, area_t1)

        y_int_tan = jnp.where(cpan, vs_u - t_u * u, zeros)
        new_yl = jnp.where(cpan, t_u * l + y_int_tan, zeros)
        area_t2 = jnp.where(cpan, 0.5 * jnp.abs(new_yl - vs_l) * diff, zeros)

        ind_v2_gt_v1 = jnp.logical_and(cpan, area_t1 < area_t2)
        ind_v1_ge_v2 = jnp.logical_and(cpan, area_t2 <= area_t1)
        slope_l = jnp.where(ind_v2_gt_v1, zeros, slope_l)
        slope_l = jnp.where(ind_v1_ge_v2, t_u, slope_l)

        slope_u = jnp.where(cnc, t_l, slope_u)
        slope_u = jnp.where(cnnc, all_slope, slope_u)          # redundant (already set via cpan), kept for fidelity

        area_box = jnp.where(cnc, jnp.abs(vs_l + 0.5) * diff, zeros)
        y_int_tan_cnc = vs_l - t_l * l
        y_int_tan = jnp.where(cnc, y_int_tan_cnc, y_int_tan)
        intercept_x = jnp.where(cnc, (-y_int_tan_cnc - 0.5) / t_l, intercept_x)
        area_t1 = jnp.where(cnc, 0.5 * jnp.abs(vs_l + 0.5) * (intercept_x - l), area_t1)
        area_cut = jnp.where(cnc, 0.5 * jnp.abs(vs_u + 0.5) * (intercept_x - u), area_cut)
        area_t1 = jnp.where(cnc, area_t1 - area_cut, area_t1)

        itsb = jnp.logical_and(cnc, area_t1 < area_box)        # triangle strictly smaller than box
        box_le = jnp.logical_and(cnc, area_box <= area_t1)     # complement within cnc

        new_bound = jnp.where(
            itsb, 0.5 * (t_l + jnp.sqrt(t_l * t_l + 4.0 * (y_int_tan + 0.5))), zeros)
        u_mod = jnp.where(itsb, new_bound, u)
        vs_u_mod = jnp.where(itsb, _spu(new_bound), vs_u)

        slope_l = jnp.where(box_le, zeros, slope_l)
        slope_u = jnp.where(box_le, zeros, slope_u)

    # swap where the chord slope is negative (computed from the original all_slope)
    switched = all_slope < 0.0
    vs_l_sw = jnp.where(switched, vs_u_mod, vs_l)
    vs_u_sw = jnp.where(switched, vs_l, vs_u_mod)
    out_l = jnp.where(cross, -0.5, vs_l_sw)
    out_u = vs_u_sw

    l_sw = jnp.where(switched, u_mod, l)
    u_sw = jnp.where(switched, l, u_mod)
    shift_u = vs_u_sw - slope_u * u_sw
    shift_l = vs_l_sw - slope_l * l_sw
    if box:
        shift_l = jnp.where(cross, -0.5, shift_l)
    else:
        shift_l = jnp.where(cross_neg, -0.5, shift_l)
        shift_l = jnp.where(ind_v2_gt_v1, -0.5, shift_l)
        shift_l = jnp.where(ind_v1_ge_v2, y_int_tan, shift_l)

    return out_l, out_u, slope_l, slope_u, shift_l, shift_u


# ----------------------------------------------------------------------------
# Pallas kernel + wrapper.
# ----------------------------------------------------------------------------
def _spu_transformer_kernel(l_ref, u_ref,
                            out_l_ref, out_u_ref,
                            slope_l_ref, slope_u_ref,
                            shift_l_ref, shift_u_ref,
                            *, box):
    out_l, out_u, sl, su, tl, tu = _spu_transform_math(l_ref[...], u_ref[...], box)
    out_l_ref[...] = out_l
    out_u_ref[...] = out_u
    slope_l_ref[...] = sl
    slope_u_ref[...] = su
    shift_l_ref[...] = tl
    shift_u_ref[...] = tu


def spu_transformer_forward(bounds, *, box=False):
    """Pallas implementation of SPUTransformer.forward (steps_backsub == 0).

    bounds: (N, 2) array, column 0 = lower, column 1 = upper.
    Returns (out_bounds, slopes, shifts), each (N, 2) float32. `out_bounds`
    is the tensor the PyTorch forward returns (self.bounds); slopes/shifts
    are the linear-relaxation state the module stores for back-substitution.
    """
    bounds = jnp.asarray(bounds)
    assert bounds.ndim == 2 and bounds.shape[1] == 2
    n = bounds.shape[0]
    l = bounds[:, 0].astype(jnp.float32)
    u = bounds[:, 1].astype(jnp.float32)

    rows_min = -(-n // _LANE)
    if rows_min <= _MAX_BLOCK_ROWS:
        block_rows = max(8, ((rows_min + 7) // 8) * 8)
    else:
        block_rows = _MAX_BLOCK_ROWS
    rows = ((rows_min + block_rows - 1) // block_rows) * block_rows
    pad = rows * _LANE - n

    # One pad per operand (no concatenate chain). The pad region is a benign
    # "positive" interval [0, 1] so dead lanes never divide by zero.
    l2d = jnp.pad(l, (0, pad), constant_values=0.0).reshape(rows, _LANE)
    u2d = jnp.pad(u, (0, pad), constant_values=1.0).reshape(rows, _LANE)

    grid = (rows // block_rows,)
    spec = pl.BlockSpec((block_rows, _LANE), lambda i: (i, 0))
    out_sds = jax.ShapeDtypeStruct((rows, _LANE), jnp.float32)

    outs = pl.pallas_call(
        functools.partial(_spu_transformer_kernel, box=box),
        grid=grid,
        in_specs=[spec, spec],
        out_specs=(spec,) * 6,
        out_shape=(out_sds,) * 6,
        compiler_params=pltpu.CompilerParams(
            dimension_semantics=("parallel",)),   # shards tiles across v7x's 2 TCs
    )(l2d, u2d)

    def _unpack(a, b):
        return jnp.stack([a.reshape(-1)[:n], b.reshape(-1)[:n]], axis=1)

    out_bounds = _unpack(outs[0], outs[1])
    slopes = _unpack(outs[2], outs[3])
    shifts = _unpack(outs[4], outs[5])
    return out_bounds, slopes, shifts


# ----------------------------------------------------------------------------
# NumPy reference that mirrors the PyTorch masked-assignment code line by line.
# ----------------------------------------------------------------------------
def _spu_np(x):
    x = np.asarray(x, np.float32)
    return np.where(x >= 0, x * x - np.float32(0.5),
                    np.float32(1.0) / (np.float32(1.0) + np.exp(x)) - np.float32(1.0))


def _dspu_np(x):
    x = np.asarray(x, np.float32)
    s = np.float32(1.0) / (np.float32(1.0) + np.exp(x))
    return np.where(x >= 0, np.float32(2.0) * x, -s * (np.float32(1.0) - s))


def _reference_forward_np(bounds_in, box=False):
    bounds = np.array(bounds_in, dtype=np.float32, copy=True)
    n = bounds.shape[0]
    slopes = np.zeros_like(bounds)
    shifts = np.zeros_like(bounds)
    val_spu = _spu_np(bounds)
    diff = bounds[:, 1] - bounds[:, 0]
    neg = bounds[:, 1] < 0
    pos = bounds[:, 0] >= 0
    cross = ~(neg | pos)
    all_slopes = (val_spu[:, 1] - val_spu[:, 0]) / diff
    if not box:
        tangent = _dspu_np(bounds)
        cross_pos = (all_slopes > 0) & cross
        cross_neg = (all_slopes < 0) & cross
        slopes[pos, 1] = all_slopes[pos]
        slopes[pos, 0] = tangent[pos, 0]
        slopes[neg, 0] = all_slopes[neg]
        slopes[neg, 1] = tangent[neg, 0]
        area_box = np.zeros(n, np.float32)
        area_t1 = np.zeros(n, np.float32)
        area_t2 = np.zeros(n, np.float32)
        area_cut = np.zeros(n, np.float32)
        shifts_temp = np.zeros(n, np.float32)
        y_int_tan = np.zeros(n, np.float32)
        intercept_x = np.zeros(n, np.float32)
        new_bound = np.zeros(n, np.float32)
        new_yl = np.zeros(n, np.float32)
        cnc = (all_slopes < tangent[:, 0]) & cross_neg
        cnnc = (all_slopes >= tangent[:, 0]) & cross_neg
        cpan = cross_pos | cnnc
        slopes[cpan, 1] = all_slopes[cpan]
        shifts_temp[cpan] = val_spu[cpan, 1] - slopes[cpan, 1] * bounds[cpan, 1]
        intercept_x[cpan] = (-shifts_temp[cpan] - 0.5) / slopes[cpan, 1]
        area_t1[cross_pos] = 0.5 * np.abs(val_spu[cross_pos, 1] + 0.5) * (bounds[cross_pos, 1] - intercept_x[cross_pos])
        area_cut[cross_pos] = 0.5 * np.abs(val_spu[cross_pos, 0] + 0.5) * (bounds[cross_pos, 0] - intercept_x[cross_pos])
        area_t1[cnnc] = 0.5 * np.abs(val_spu[cnnc, 0] + 0.5) * (intercept_x[cnnc] - bounds[cnnc, 0])
        area_cut[cnnc] = 0.5 * np.abs(val_spu[cnnc, 1] + 0.5) * (intercept_x[cnnc] - bounds[cnnc, 1])
        area_t1[cpan] = area_t1[cpan] - area_cut[cpan]
        y_int_tan[cpan] = val_spu[cpan, 1] - tangent[cpan, 1] * bounds[cpan, 1]
        new_yl[cpan] = tangent[cpan, 1] * bounds[cpan, 0] + y_int_tan[cpan]
        area_t2[cpan] = 0.5 * np.abs(new_yl[cpan] - val_spu[cpan, 0]) * diff[cpan]
        ind_v2 = cpan & (area_t1 < area_t2)
        ind_v1 = cpan & (area_t2 <= area_t1)
        slopes[ind_v2, 0] = 0
        slopes[ind_v1, 0] = tangent[ind_v1, 1]
        slopes[cnc, 1] = tangent[cnc, 0]
        slopes[cnnc, 1] = all_slopes[cnnc]
        area_box[cnc] = np.abs(val_spu[cnc, 0] + 0.5) * diff[cnc]
        y_int_tan[cnc] = val_spu[cnc, 0] - tangent[cnc, 0] * bounds[cnc, 0]
        intercept_x[cnc] = (-y_int_tan[cnc] - 0.5) / tangent[cnc, 0]
        area_t1[cnc] = 0.5 * np.abs(val_spu[cnc, 0] + 0.5) * (intercept_x[cnc] - bounds[cnc, 0])
        area_cut[cnc] = 0.5 * np.abs(val_spu[cnc, 1] + 0.5) * (intercept_x[cnc] - bounds[cnc, 1])
        area_t1[cnc] = area_t1[cnc] - area_cut[cnc]
        itsb = cnc & (area_t1 < area_box)
        new_bound[itsb] = 0.5 * (tangent[itsb, 0] + np.sqrt(np.square(tangent[itsb, 0]) + 4 * (y_int_tan[itsb] + 0.5)))
        bounds[itsb, 1] = new_bound[itsb]
        val_spu[itsb, 1] = _spu_np(bounds[itsb, 1])
        box_le = cnc & (area_box <= area_t1)
        slopes[box_le, 0] = 0
        slopes[box_le, 1] = 0
    switched = all_slopes < 0
    new_upper = val_spu[switched, 0].copy()
    new_lower = val_spu[switched, 1].copy()
    val_spu[switched, 0] = new_lower
    val_spu[switched, 1] = new_upper
    out = val_spu.copy()
    out[cross, 0] = -0.5
    new_upper2 = bounds[switched, 0].copy()
    new_lower2 = bounds[switched, 1].copy()
    bounds[switched, 0] = new_lower2
    bounds[switched, 1] = new_upper2
    shifts[:, 1] = val_spu[:, 1] - slopes[:, 1] * bounds[:, 1]
    shifts[:, 0] = val_spu[:, 0] - slopes[:, 0] * bounds[:, 0]
    if box:
        shifts[cross, 0] = -0.5
    else:
        shifts[cross_neg, 0] = -0.5
        shifts[ind_v2, 0] = -0.5
        shifts[ind_v1, 0] = y_int_tan[ind_v1]
    return out, slopes, shifts


if __name__ == "__main__":
    key = jax.random.PRNGKey(0)
    n = 200  # small layer of abstract neurons
    k1, k2 = jax.random.split(key)
    center = jax.random.uniform(k1, (n,), minval=-3.0, maxval=3.0)
    halfwidth = jax.random.uniform(k2, (n,), minval=0.05, maxval=1.5)
    bounds = jnp.stack([center - halfwidth, center + halfwidth], axis=1).astype(jnp.float32)

    out_bounds, slopes, shifts = spu_transformer_forward(bounds, box=False)
    out_bounds, slopes, shifts = jax.block_until_ready((out_bounds, slopes, shifts))

    # 1) Tight check against the identical math run as plain JAX on the same
    #    device (validates Pallas tiling / padding / layout plumbing).
    jl, ju, jsl, jsu, jtl, jtu = _spu_transform_math(bounds[:, 0], bounds[:, 1], box=False)
    assert jnp.allclose(out_bounds, jnp.stack([jl, ju], 1), atol=1e-5, rtol=1e-5)
    assert jnp.allclose(slopes, jnp.stack([jsl, jsu], 1), atol=1e-5, rtol=1e-5)
    assert jnp.allclose(shifts, jnp.stack([jtl, jtu], 1), atol=1e-5, rtol=1e-5)

    # 2) Semantic check against a NumPy transcription of the PyTorch code.
    nb, ns, nt = _reference_forward_np(np.asarray(bounds), box=False)
    assert np.allclose(np.asarray(out_bounds), nb, atol=2e-3, rtol=2e-3)
    assert np.allclose(np.asarray(slopes), ns, atol=2e-3, rtol=2e-3)
    assert np.allclose(np.asarray(shifts), nt, atol=2e-3, rtol=2e-3)

    # 3) The module's own final invariant: lower <= upper (+eps).
    assert bool(jnp.all(out_bounds[:, 0] <= out_bounds[:, 1] + 1e-5))

    print("KERNEL_OK")
</pallas_src>

<mosaic_0001>
module attributes {stable_mosaic.version = 11 : i64} {
  func.func @_spu_transformer_kernel(%arg0: i32, %arg1: memref<8x128xf32, #tpu.memory_space<vmem>>, %arg2: memref<8x128xf32, #tpu.memory_space<vmem>>, %arg3: memref<8x128xf32, #tpu.memory_space<vmem>>, %arg4: memref<8x128xf32, #tpu.memory_space<vmem>>, %arg5: memref<8x128xf32, #tpu.memory_space<vmem>>, %arg6: memref<8x128xf32, #tpu.memory_space<vmem>>, %arg7: memref<8x128xf32, #tpu.memory_space<vmem>>, %arg8: memref<8x128xf32, #tpu.memory_space<vmem>>) attributes {dimension_semantics = [#tpu.dimension_semantics<parallel>], iteration_bounds = array<i64: 1>, scalar_prefetch = 0 : i64, scratch_operands = 0 : i64, tpu.core_type = #tpu.core_type<tc>, window_params = [{transform_indices = @transform_0, window_bounds = array<i64: 8, 128>}, {transform_indices = @transform_1, window_bounds = array<i64: 8, 128>}, {transform_indices = @transform_2, window_bounds = array<i64: 8, 128>}, {transform_indices = @transform_3, window_bounds = array<i64: 8, 128>}, {transform_indices = @transform_4, window_bounds = array<i64: 8, 128>}, {transform_indices = @transform_5, window_bounds = array<i64: 8, 128>}, {transform_indices = @transform_6, window_bounds = array<i64: 8, 128>}, {transform_indices = @transform_7, window_bounds = array<i64: 8, 128>}]} {
    %c0 = arith.constant 0 : index
    %c0_0 = arith.constant 0 : index
    %0 = vector.load %arg1[%c0, %c0_0] : memref<8x128xf32, #tpu.memory_space<vmem>>, vector<8x128xf32>
    %c0_1 = arith.constant 0 : index
    %c0_2 = arith.constant 0 : index
    %1 = vector.load %arg2[%c0_1, %c0_2] : memref<8x128xf32, #tpu.memory_space<vmem>>, vector<8x128xf32>
    %cst = arith.constant 0.000000e+00 : f32
    %2 = vector.broadcast %cst : f32 to vector<8x128xf32>
    %3 = math.exp %0 : vector<8x128xf32>
    %cst_3 = arith.constant 1.000000e+00 : f32
    %4 = vector.broadcast %cst_3 : f32 to vector<8x128xf32>
    %5 = arith.addf %4, %3 : vector<8x128xf32>
    %cst_4 = arith.constant 1.000000e+00 : f32
    %6 = vector.broadcast %cst_4 : f32 to vector<8x128xf32>
    %7 = arith.divf %6, %5 : vector<8x128xf32>
    %cst_5 = arith.constant 0.000000e+00 : f32
    %8 = vector.broadcast %cst_5 : f32 to vector<8x128xf32>
    %9 = arith.cmpf oge, %0, %8 : vector<8x128xf32>
    %10 = arith.mulf %0, %0 : vector<8x128xf32>
    %cst_6 = arith.constant 5.000000e-01 : f32
    %11 = vector.broadcast %cst_6 : f32 to vector<8x128xf32>
    %12 = arith.subf %10, %11 : vector<8x128xf32>
    %cst_7 = arith.constant 1.000000e+00 : f32
    %13 = vector.broadcast %cst_7 : f32 to vector<8x128xf32>
    %14 = arith.subf %7, %13 : vector<8x128xf32>
    %15 = arith.select %9, %12, %14 : vector<8x128xi1>, vector<8x128xf32>
    %16 = math.exp %1 : vector<8x128xf32>
    %cst_8 = arith.constant 1.000000e+00 : f32
    %17 = vector.broadcast %cst_8 : f32 to vector<8x128xf32>
    %18 = arith.addf %17, %16 : vector<8x128xf32>
    %cst_9 = arith.constant 1.000000e+00 : f32
    %19 = vector.broadcast %cst_9 : f32 to vector<8x128xf32>
    %20 = arith.divf %19, %18 : vector<8x128xf32>
    %cst_10 = arith.constant 0.000000e+00 : f32
    %21 = vector.broadcast %cst_10 : f32 to vector<8x128xf32>
    %22 = arith.cmpf oge, %1, %21 : vector<8x128xf32>
    %23 = arith.mulf %1, %1 : vector<8x128xf32>
    %cst_11 = arith.constant 5.000000e-01 : f32
    %24 = vector.broadcast %cst_11 : f32 to vector<8x128xf32>
    %25 = arith.subf %23, %24 : vector<8x128xf32>
    %cst_12 = arith.constant 1.000000e+00 : f32
    %26 = vector.broadcast %cst_12 : f32 to vector<8x128xf32>
    %27 = arith.subf %20, %26 : vector<8x128xf32>
    %28 = arith.select %22, %25, %27 : vector<8x128xi1>, vector<8x128xf32>
    %29 = arith.subf %1, %0 : vector<8x128xf32>
    %cst_13 = arith.constant 0.000000e+00 : f32
    %30 = vector.broadcast %cst_13 : f32 to vector<8x128xf32>
    %31 = arith.cmpf olt, %1, %30 : vector<8x128xf32>
    %cst_14 = arith.constant 0.000000e+00 : f32
    %32 = vector.broadcast %cst_14 : f32 to vector<8x128xf32>
    %33 = arith.cmpf oge, %0, %32 : vector<8x128xf32>
    %34 = arith.ori %31, %33 : vector<8x128xi1>
    %cst_15 = arith.constant dense<true> : vector<8x128xi1>
    %35 = arith.xori %34, %cst_15 : vector<8x128xi1>
    %36 = arith.subf %28, %15 : vector<8x128xf32>
    %37 = arith.divf %36, %29 : vector<8x128xf32>
    %38 = math.exp %0 : vector<8x128xf32>
    %cst_16 = arith.constant 1.000000e+00 : f32
    %39 = vector.broadcast %cst_16 : f32 to vector<8x128xf32>
    %40 = arith.addf %39, %38 : vector<8x128xf32>
    %cst_17 = arith.constant 1.000000e+00 : f32
    %41 = vector.broadcast %cst_17 : f32 to vector<8x128xf32>
    %42 = arith.divf %41, %40 : vector<8x128xf32>
    %cst_18 = arith.constant 0.000000e+00 : f32
    %43 = vector.broadcast %cst_18 : f32 to vector<8x128xf32>
    %44 = arith.cmpf oge, %0, %43 : vector<8x128xf32>
    %cst_19 = arith.constant 2.000000e+00 : f32
    %45 = vector.broadcast %cst_19 : f32 to vector<8x128xf32>
    %46 = arith.mulf %45, %0 : vector<8x128xf32>
    %cst_20 = arith.constant 0.000000e+00 : f32
    %47 = vector.broadcast %cst_20 : f32 to vector<8x128xf32>
    %48 = arith.subf %47, %42 : vector<8x128xf32>
    %cst_21 = arith.constant 1.000000e+00 : f32
    %49 = vector.broadcast %cst_21 : f32 to vector<8x128xf32>
    %50 = arith.subf %49, %42 : vector<8x128xf32>
    %51 = arith.mulf %48, %50 : vector<8x128xf32>
    %52 = arith.select %44, %46, %51 : vector<8x128xi1>, vector<8x128xf32>
    %53 = math.exp %1 : vector<8x128xf32>
    %cst_22 = arith.constant 1.000000e+00 : f32
    %54 = vector.broadcast %cst_22 : f32 to vector<8x128xf32>
    %55 = arith.addf %54, %53 : vector<8x128xf32>
    %cst_23 = arith.constant 1.000000e+00 : f32
    %56 = vector.broadcast %cst_23 : f32 to vector<8x128xf32>
    %57 = arith.divf %56, %55 : vector<8x128xf32>
    %cst_24 = arith.constant 0.000000e+00 : f32
    %58 = vector.broadcast %cst_24 : f32 to vector<8x128xf32>
    %59 = arith.cmpf oge, %1, %58 : vector<8x128xf32>
    %cst_25 = arith.constant 2.000000e+00 : f32
    %60 = vector.broadcast %cst_25 : f32 to vector<8x128xf32>
    %61 = arith.mulf %60, %1 : vector<8x128xf32>
    %cst_26 = arith.constant 0.000000e+00 : f32
    %62 = vector.broadcast %cst_26 : f32 to vector<8x128xf32>
    %63 = arith.subf %62, %57 : vector<8x128xf32>
    %cst_27 = arith.constant 1.000000e+00 : f32
    %64 = vector.broadcast %cst_27 : f32 to vector<8x128xf32>
    %65 = arith.subf %64, %57 : vector<8x128xf32>
    %66 = arith.mulf %63, %65 : vector<8x128xf32>
    %67 = arith.select %59, %61, %66 : vector<8x128xi1>, vector<8x128xf32>
    %cst_28 = arith.constant 0.000000e+00 : f32
    %68 = vector.broadcast %cst_28 : f32 to vector<8x128xf32>
    %69 = arith.cmpf ogt, %37, %68 : vector<8x128xf32>
    %70 = arith.andi %69, %35 : vector<8x128xi1>
    %cst_29 = arith.constant 0.000000e+00 : f32
    %71 = vector.broadcast %cst_29 : f32 to vector<8x128xf32>
    %72 = arith.cmpf olt, %37, %71 : vector<8x128xf32>
    %73 = arith.andi %72, %35 : vector<8x128xi1>
    %74 = arith.select %33, %37, %2 : vector<8x128xi1>, vector<8x128xf32>
    %75 = arith.select %33, %52, %2 : vector<8x128xi1>, vector<8x128xf32>
    %76 = arith.select %31, %37, %75 : vector<8x128xi1>, vector<8x128xf32>
    %77 = arith.select %31, %52, %74 : vector<8x128xi1>, vector<8x128xf32>
    %78 = arith.cmpf olt, %37, %52 : vector<8x128xf32>
    %79 = arith.andi %78, %73 : vector<8x128xi1>
    %80 = arith.cmpf oge, %37, %52 : vector<8x128xf32>
    %81 = arith.andi %80, %73 : vector<8x128xi1>
    %82 = arith.ori %70, %81 : vector<8x128xi1>
    %83 = arith.select %82, %37, %77 : vector<8x128xi1>, vector<8x128xf32>
    %84 = arith.mulf %37, %1 : vector<8x128xf32>
    %85 = arith.subf %28, %84 : vector<8x128xf32>
    %86 = arith.select %82, %85, %2 : vector<8x128xi1>, vector<8x128xf32>
    %cst_30 = arith.constant 0.000000e+00 : f32
    %87 = vector.broadcast %cst_30 : f32 to vector<8x128xf32>
    %88 = arith.subf %87, %86 : vector<8x128xf32>
    %cst_31 = arith.constant 5.000000e-01 : f32
    %89 = vector.broadcast %cst_31 : f32 to vector<8x128xf32>
    %90 = arith.subf %88, %89 : vector<8x128xf32>
    %91 = arith.divf %90, %37 : vector<8x128xf32>
    %92 = arith.select %82, %91, %2 : vector<8x128xi1>, vector<8x128xf32>
    %cst_32 = arith.constant 5.000000e-01 : f32
    %93 = vector.broadcast %cst_32 : f32 to vector<8x128xf32>
    %94 = arith.addf %28, %93 : vector<8x128xf32>
    %95 = math.absf %94 : vector<8x128xf32>
    %cst_33 = arith.constant 5.000000e-01 : f32
    %96 = vector.broadcast %cst_33 : f32 to vector<8x128xf32>
    %97 = arith.mulf %96, %95 : vector<8x128xf32>
    %98 = arith.subf %1, %92 : vector<8x128xf32>
    %99 = arith.mulf %97, %98 : vector<8x128xf32>
    %100 = arith.select %70, %99, %2 : vector<8x128xi1>, vector<8x128xf32>
    %cst_34 = arith.constant 5.000000e-01 : f32
    %101 = vector.broadcast %cst_34 : f32 to vector<8x128xf32>
    %102 = arith.addf %15, %101 : vector<8x128xf32>
    %103 = math.absf %102 : vector<8x128xf32>
    %cst_35 = arith.constant 5.000000e-01 : f32
    %104 = vector.broadcast %cst_35 : f32 to vector<8x128xf32>
    %105 = arith.mulf %104, %103 : vector<8x128xf32>
    %106 = arith.subf %0, %92 : vector<8x128xf32>
    %107 = arith.mulf %105, %106 : vector<8x128xf32>
    %108 = arith.select %70, %107, %2 : vector<8x128xi1>, vector<8x128xf32>
    %cst_36 = arith.constant 5.000000e-01 : f32
    %109 = vector.broadcast %cst_36 : f32 to vector<8x128xf32>
    %110 = arith.addf %15, %109 : vector<8x128xf32>
    %111 = math.absf %110 : vector<8x128xf32>
    %cst_37 = arith.constant 5.000000e-01 : f32
    %112 = vector.broadcast %cst_37 : f32 to vector<8x128xf32>
    %113 = arith.mulf %112, %111 : vector<8x128xf32>
    %114 = arith.subf %92, %0 : vector<8x128xf32>
    %115 = arith.mulf %113, %114 : vector<8x128xf32>
    %116 = arith.select %81, %115, %100 : vector<8x128xi1>, vector<8x128xf32>
    %cst_38 = arith.constant 5.000000e-01 : f32
    %117 = vector.broadcast %cst_38 : f32 to vector<8x128xf32>
    %118 = arith.addf %28, %117 : vector<8x128xf32>
    %119 = math.absf %118 : vector<8x128xf32>
    %cst_39 = arith.constant 5.000000e-01 : f32
    %120 = vector.broadcast %cst_39 : f32 to vector<8x128xf32>
    %121 = arith.mulf %120, %119 : vector<8x128xf32>
    %122 = arith.subf %92, %1 : vector<8x128xf32>
    %123 = arith.mulf %121, %122 : vector<8x128xf32>
    %124 = arith.select %81, %123, %108 : vector<8x128xi1>, vector<8x128xf32>
    %125 = arith.subf %116, %124 : vector<8x128xf32>
    %126 = arith.select %82, %125, %116 : vector<8x128xi1>, vector<8x128xf32>
    %127 = arith.mulf %67, %1 : vector<8x128xf32>
    %128 = arith.subf %28, %127 : vector<8x128xf32>
    %129 = arith.select %82, %128, %2 : vector<8x128xi1>, vector<8x128xf32>
    %130 = arith.mulf %67, %0 : vector<8x128xf32>
    %131 = arith.addf %130, %129 : vector<8x128xf32>
    %132 = arith.select %82, %131, %2 : vector<8x128xi1>, vector<8x128xf32>
    %133 = arith.subf %132, %15 : vector<8x128xf32>
    %134 = math.absf %133 : vector<8x128xf32>
    %cst_40 = arith.constant 5.000000e-01 : f32
    %135 = vector.broadcast %cst_40 : f32 to vector<8x128xf32>
    %136 = arith.mulf %135, %134 : vector<8x128xf32>
    %137 = arith.mulf %136, %29 : vector<8x128xf32>
    %138 = arith.select %82, %137, %2 : vector<8x128xi1>, vector<8x128xf32>
    %139 = arith.cmpf olt, %126, %138 : vector<8x128xf32>
    %140 = arith.andi %82, %139 : vector<8x128xi1>
    %141 = arith.cmpf ole, %138, %126 : vector<8x128xf32>
    %142 = arith.andi %82, %141 : vector<8x128xi1>
    %143 = arith.select %140, %2, %76 : vector<8x128xi1>, vector<8x128xf32>
    %144 = arith.select %142, %67, %143 : vector<8x128xi1>, vector<8x128xf32>
    %145 = arith.select %79, %52, %83 : vector<8x128xi1>, vector<8x128xf32>
    %146 = arith.select %81, %37, %145 : vector<8x128xi1>, vector<8x128xf32>
    %cst_41 = arith.constant 5.000000e-01 : f32
    %147 = vector.broadcast %cst_41 : f32 to vector<8x128xf32>
    %148 = arith.addf %15, %147 : vector<8x128xf32>
    %149 = math.absf %148 : vector<8x128xf32>
    %150 = arith.mulf %149, %29 : vector<8x128xf32>
    %151 = arith.select %79, %150, %2 : vector<8x128xi1>, vector<8x128xf32>
    %152 = arith.mulf %52, %0 : vector<8x128xf32>
    %153 = arith.subf %15, %152 : vector<8x128xf32>
    %154 = arith.select %79, %153, %129 : vector<8x128xi1>, vector<8x128xf32>
    %cst_42 = arith.constant 0.000000e+00 : f32
    %155 = vector.broadcast %cst_42 : f32 to vector<8x128xf32>
    %156 = arith.subf %155, %153 : vector<8x128xf32>
    %cst_43 = arith.constant 5.000000e-01 : f32
    %157 = vector.broadcast %cst_43 : f32 to vector<8x128xf32>
    %158 = arith.subf %156, %157 : vector<8x128xf32>
    %159 = arith.divf %158, %52 : vector<8x128xf32>
    %160 = arith.select %79, %159, %92 : vector<8x128xi1>, vector<8x128xf32>
    %cst_44 = arith.constant 5.000000e-01 : f32
    %161 = vector.broadcast %cst_44 : f32 to vector<8x128xf32>
    %162 = arith.addf %15, %161 : vector<8x128xf32>
    %163 = math.absf %162 : vector<8x128xf32>
    %cst_45 = arith.constant 5.000000e-01 : f32
    %164 = vector.broadcast %cst_45 : f32 to vector<8x128xf32>
    %165 = arith.mulf %164, %163 : vector<8x128xf32>
    %166 = arith.subf %160, %0 : vector<8x128xf32>
    %167 = arith.mulf %165, %166 : vector<8x128xf32>
    %168 = arith.select %79, %167, %126 : vector<8x128xi1>, vector<8x128xf32>
    %cst_46 = arith.constant 5.000000e-01 : f32
    %169 = vector.broadcast %cst_46 : f32 to vector<8x128xf32>
    %170 = arith.addf %28, %169 : vector<8x128xf32>
    %171 = math.absf %170 : vector<8x128xf32>
    %cst_47 = arith.constant 5.000000e-01 : f32
    %172 = vector.broadcast %cst_47 : f32 to vector<8x128xf32>
    %173 = arith.mulf %172, %171 : vector<8x128xf32>
    %174 = arith.subf %160, %1 : vector<8x128xf32>
    %175 = arith.mulf %173, %174 : vector<8x128xf32>
    %176 = arith.select %79, %175, %124 : vector<8x128xi1>, vector<8x128xf32>
    %177 = arith.subf %168, %176 : vector<8x128xf32>
    %178 = arith.select %79, %177, %168 : vector<8x128xi1>, vector<8x128xf32>
    %179 = arith.cmpf olt, %178, %151 : vector<8x128xf32>
    %180 = arith.andi %79, %179 : vector<8x128xi1>
    %181 = arith.cmpf ole, %151, %178 : vector<8x128xf32>
    %182 = arith.andi %79, %181 : vector<8x128xi1>
    %183 = arith.mulf %52, %52 : vector<8x128xf32>
    %cst_48 = arith.constant 5.000000e-01 : f32
    %184 = vector.broadcast %cst_48 : f32 to vector<8x128xf32>
    %185 = arith.addf %154, %184 : vector<8x128xf32>
    %cst_49 = arith.constant 4.000000e+00 : f32
    %186 = vector.broadcast %cst_49 : f32 to vector<8x128xf32>
    %187 = arith.mulf %186, %185 : vector<8x128xf32>
    %188 = arith.addf %183, %187 : vector<8x128xf32>
    %189 = math.sqrt %188 : vector<8x128xf32>
    %190 = arith.addf %52, %189 : vector<8x128xf32>
    %cst_50 = arith.constant 5.000000e-01 : f32
    %191 = vector.broadcast %cst_50 : f32 to vector<8x128xf32>
    %192 = arith.mulf %191, %190 : vector<8x128xf32>
    %193 = arith.select %180, %192, %2 : vector<8x128xi1>, vector<8x128xf32>
    %194 = arith.select %180, %193, %1 : vector<8x128xi1>, vector<8x128xf32>
    %195 = math.exp %193 : vector<8x128xf32>
    %cst_51 = arith.constant 1.000000e+00 : f32
    %196 = vector.broadcast %cst_51 : f32 to vector<8x128xf32>
    %197 = arith.addf %196, %195 : vector<8x128xf32>
    %cst_52 = arith.constant 1.000000e+00 : f32
    %198 = vector.broadcast %cst_52 : f32 to vector<8x128xf32>
    %199 = arith.divf %198, %197 : vector<8x128xf32>
    %cst_53 = arith.constant 0.000000e+00 : f32
    %200 = vector.broadcast %cst_53 : f32 to vector<8x128xf32>
    %201 = arith.cmpf oge, %193, %200 : vector<8x128xf32>
    %202 = arith.mulf %193, %193 : vector<8x128xf32>
    %cst_54 = arith.constant 5.000000e-01 : f32
    %203 = vector.broadcast %cst_54 : f32 to vector<8x128xf32>
    %204 = arith.subf %202, %203 : vector<8x128xf32>
    %cst_55 = arith.constant 1.000000e+00 : f32
    %205 = vector.broadcast %cst_55 : f32 to vector<8x128xf32>
    %206 = arith.subf %199, %205 : vector<8x128xf32>
    %207 = arith.select %201, %204, %206 : vector<8x128xi1>, vector<8x128xf32>
    %208 = arith.select %180, %207, %28 : vector<8x128xi1>, vector<8x128xf32>
    %209 = arith.select %182, %2, %144 : vector<8x128xi1>, vector<8x128xf32>
    %210 = arith.select %182, %2, %146 : vector<8x128xi1>, vector<8x128xf32>
    %cst_56 = arith.constant 0.000000e+00 : f32
    %211 = vector.broadcast %cst_56 : f32 to vector<8x128xf32>
    %212 = arith.cmpf olt, %37, %211 : vector<8x128xf32>
    %213 = arith.select %212, %208, %15 : vector<8x128xi1>, vector<8x128xf32>
    %214 = arith.select %212, %15, %208 : vector<8x128xi1>, vector<8x128xf32>
    %cst_57 = arith.constant -5.000000e-01 : f32
    %215 = vector.broadcast %cst_57 : f32 to vector<8x128xf32>
    %216 = arith.select %35, %215, %213 : vector<8x128xi1>, vector<8x128xf32>
    %217 = arith.select %212, %194, %0 : vector<8x128xi1>, vector<8x128xf32>
    %218 = arith.select %212, %0, %194 : vector<8x128xi1>, vector<8x128xf32>
    %219 = arith.mulf %210, %218 : vector<8x128xf32>
    %220 = arith.subf %214, %219 : vector<8x128xf32>
    %221 = arith.mulf %209, %217 : vector<8x128xf32>
    %222 = arith.subf %213, %221 : vector<8x128xf32>
    %cst_58 = arith.constant -5.000000e-01 : f32
    %223 = vector.broadcast %cst_58 : f32 to vector<8x128xf32>
    %224 = arith.select %73, %223, %222 : vector<8x128xi1>, vector<8x128xf32>
    %cst_59 = arith.constant -5.000000e-01 : f32
    %225 = vector.broadcast %cst_59 : f32 to vector<8x128xf32>
    %226 = arith.select %140, %225, %224 : vector<8x128xi1>, vector<8x128xf32>
    %227 = arith.select %142, %154, %226 : vector<8x128xi1>, vector<8x128xf32>
    %c0_60 = arith.constant 0 : index
    %c0_61 = arith.constant 0 : index
    %228 = vector.load %arg3[%c0_60, %c0_61] : memref<8x128xf32, #tpu.memory_space<vmem>>, vector<8x128xf32>
    tpu.vector_store %arg3[%c0_60, %c0_61], %216 {strides = array<i32>} : memref<8x128xf32, #tpu.memory_space<vmem>>, vector<8x128xf32>,
    %c0_62 = arith.constant 0 : index
    %c0_63 = arith.constant 0 : index
    %229 = vector.load %arg4[%c0_62, %c0_63] : memref<8x128xf32, #tpu.memory_space<vmem>>, vector<8x128xf32>
    tpu.vector_store %arg4[%c0_62, %c0_63], %214 {strides = array<i32>} : memref<8x128xf32, #tpu.memory_space<vmem>>, vector<8x128xf32>,
    %c0_64 = arith.constant 0 : index
    %c0_65 = arith.constant 0 : index
    %230 = vector.load %arg5[%c0_64, %c0_65] : memref<8x128xf32, #tpu.memory_space<vmem>>, vector<8x128xf32>
    tpu.vector_store %arg5[%c0_64, %c0_65], %209 {strides = array<i32>} : memref<8x128xf32, #tpu.memory_space<vmem>>, vector<8x128xf32>,
    %c0_66 = arith.constant 0 : index
    %c0_67 = arith.constant 0 : index
    %231 = vector.load %arg6[%c0_66, %c0_67] : memref<8x128xf32, #tpu.memory_space<vmem>>, vector<8x128xf32>
    tpu.vector_store %arg6[%c0_66, %c0_67], %210 {strides = array<i32>} : memref<8x128xf32, #tpu.memory_space<vmem>>, vector<8x128xf32>,
    %c0_68 = arith.constant 0 : index
    %c0_69 = arith.constant 0 : index
    %232 = vector.load %arg7[%c0_68, %c0_69] : memref<8x128xf32, #tpu.memory_space<vmem>>, vector<8x128xf32>
    tpu.vector_store %arg7[%c0_68, %c0_69], %227 {strides = array<i32>} : memref<8x128xf32, #tpu.memory_space<vmem>>, vector<8x128xf32>,
    %c0_70 = arith.constant 0 : index
    %c0_71 = arith.constant 0 : index
    %233 = vector.load %arg8[%c0_70, %c0_71] : memref<8x128xf32, #tpu.memory_space<vmem>>, vector<8x128xf32>
    tpu.vector_store %arg8[%c0_70, %c0_71], %220 {strides = array<i32>} : memref<8x128xf32, #tpu.memory_space<vmem>>, vector<8x128xf32>,
    return
  }
  func.func @transform_0(%arg0: i32) -> (i32, i32) {
    %c0_i32 = arith.constant 0 : i32
    %c0_i32_0 = arith.constant 0 : i32
    return %arg0, %c0_i32 : i32, i32
  }
  func.func @transform_1(%arg0: i32) -> (i32, i32) {
    %c0_i32 = arith.constant 0 : i32
    %c0_i32_0 = arith.constant 0 : i32
    return %arg0, %c0_i32 : i32, i32
  }
  func.func @transform_2(%arg0: i32) -> (i32, i32) {
    %c0_i32 = arith.constant 0 : i32
    %c0_i32_0 = arith.constant 0 : i32
    return %arg0, %c0_i32 : i32, i32
  }
  func.func @transform_3(%arg0: i32) -> (i32, i32) {
    %c0_i32 = arith.constant 0 : i32
    %c0_i32_0 = arith.constant 0 : i32
    return %arg0, %c0_i32 : i32, i32
  }
  func.func @transform_4(%arg0: i32) -> (i32, i32) {
    %c0_i32 = arith.constant 0 : i32
    %c0_i32_0 = arith.constant 0 : i32
    return %arg0, %c0_i32 : i32, i32
  }
  func.func @transform_5(%arg0: i32) -> (i32, i32) {
    %c0_i32 = arith.constant 0 : i32
    %c0_i32_0 = arith.constant 0 : i32
    return %arg0, %c0_i32 : i32, i32
  }
  func.func @transform_6(%arg0: i32) -> (i32, i32) {
    %c0_i32 = arith.constant 0 : i32
    %c0_i32_0 = arith.constant 0 : i32
    return %arg0, %c0_i32 : i32, i32
  }
  func.func @transform_7(%arg0: i32) -> (i32, i32) {
    %c0_i32 = arith.constant 0 : i32
    %c0_i32_0 = arith.constant 0 : i32
    return %arg0, %c0_i32 : i32, i32
  }
}

</mosaic_0001>

<bundles_post_ra>
// kernel: tpu_custom_call.1
= control target key start
LH: loop header
LB: loop body
LE: loop exit
PB: predicated region body
PF: predicated region fallthrough
CT: control target
= control target key end

     0   :  { %13 = vsyncpa [#allocation3], 0  ;;  %s924_s0 = inlined_call_operand.hbm [shape: f32[8,128], index: 0, kind: input, shape index: {}]   ;;  %s925_s1 = inlined_call_operand.hbm [shape: f32[8,128], index: 1, kind: input, shape index: {}]   ;;  %s926_s2 = inlined_call_operand.hbm [shape: f32[8,128], index: 2, kind: output, shape index: {0}]   ;;  %s927_s3 = inlined_call_operand.hbm [shape: f32[8,128], index: 3, kind: output, shape index: {1}]   ;;  %s928_s4 = inlined_call_operand.hbm [shape: f32[8,128], index: 4, kind: output, shape index: {2}]   ;;  %s929_s5 = inlined_call_operand.hbm [shape: f32[8,128], index: 5, kind: output, shape index: {3}]   ;;  %s930_s6 = inlined_call_operand.hbm [shape: f32[8,128], index: 6, kind: output, shape index: {4}]   ;;  %s931_s7 = inlined_call_operand.hbm [shape: f32[8,128], index: 7, kind: output, shape index: {5}]  }
   0x1   :  { %14 = vsyncpa [#allocation6], 0 }
   0x2   :  { %15 = vsyncpa [#allocation4], 0 }
   0x3   :  { %16 = vsyncpa [#allocation9], 0 }
   0x4   :  { %17 = vsyncpa [#allocation12], 0 }
   0x5   :  { %18 = vsyncpa [#allocation15], 0  ;;  %s522_s24 = smov [#allocation2]   ;;  %s523_s26 = smov [#allocation5]  }
   0x6   :  { %s25_s25 = sshll.u32 %s522_s24, 4  ;;  %s35_s27 = sshll.u32 %s523_s26, 4  ;;  %s26_s25 = int_to_ptr.vmem [resolvable:$true] %s25_s25  ;;  %s36_s27 = int_to_ptr.vmem [resolvable:$true] %s35_s27 }
   0x7   :  { %s334_s30 = scalar_lea.hbm %s924_s0, 128 }
   0x8   :  { %p335_p0 = scmp.ne.s32.totalorder %s924_s0, %s334_s30  ;;  %p338_p1 = scmp.lt.u32.totalorder %s334_s30, %s924_s0 }
   0xa   :  { %p340_p2 = pnand %p338_p1, %p335_p0 }
   0xc   :  { %343 = shalt.err (!%p340_p2)
}
   0xd   :  { %s344_s12 = scalar_lea.vmem %s26_s25, 128  ;;  %p349_p4 = scmp.lt.s32.totalorder %s26_s25, %s26_s25 }
   0xe   :  { %p345_p3 = scmp.ne.s32.totalorder %s26_s25, %s344_s12  ;;  %p350_p5 = scmp.lt.s32.totalorder %s344_s12, %s344_s12 }
  0x10   :  { %p351_p6 = por %p350_p5, %p349_p4 }
  0x12   :  { %p352_p7 = pnand %p351_p6, %p345_p3 }
  0x14   :  { %355 = shalt.err (!%p352_p7)
}
  0x15   :  { %28 = dma.hbm_to_vmem [thread:$0]  %s924_s0, 128, %s26_s25, [#allocation3]  }
  0x16   :  { %s356_s17 = scalar_lea.hbm %s925_s1, 128 }
  0x17   :  { %p357_p8 = scmp.ne.s32.totalorder %s925_s1, %s356_s17  ;;  %p360_p9 = scmp.lt.u32.totalorder %s356_s17, %s925_s1 }
  0x19   :  { %p362_p10 = pnand %p360_p9, %p357_p8 }
  0x1b   :  { %365 = shalt.err (!%p362_p10)
}
  0x1c   :  { %s366_s22 = scalar_lea.vmem %s36_s27, 128  ;;  %p371_p12 = scmp.lt.s32.totalorder %s36_s27, %s36_s27 }
  0x1d   :  { %p367_p11 = scmp.ne.s32.totalorder %s36_s27, %s366_s22  ;;  %p372_p13 = scmp.lt.s32.totalorder %s366_s22, %s366_s22 }
  0x1f   :  { %p373_p0 = por %p372_p13, %p371_p12 }
  0x21   :  { %p374_p1 = pnand %p373_p0, %p367_p11 }
  0x23   :  { %377 = shalt.err (!%p374_p1)
}
  0x24   :  { %38 = dma.hbm_to_vmem [thread:$0]  %s925_s1, 128, %s36_s27, [#allocation6]  }
  0x25   :  { %510 = dma.done.wait [#allocation3], 128  }
  0x26   :  { %511 = vsyncadd [#allocation3], 4294967168 }
  0x27   :  { %512 = dma.done.wait [#allocation6], 128  }
  0x28   :  { %513 = vsyncadd [#allocation6], 4294967168  ;;  %v595_v0 = vld [vmem:[#allocation2] sm:$0xff]  ;;  %v597_v1 = vld [vmem:[#allocation5] sm:$0xff]  ;;  %vm524_vm4 = vmmov 1   ;;  %s525_s1 = smov [#allocation11]  }
  0x29   :  { %v47_v2 = vmul.f32 1.442695, %v595_v0  ;;  %v57_v3 = vmul.f32 1.442695, %v597_v1  ;;  %v603_v8 = vsub.f32 %v597_v1, %v595_v0  ;;  %v53_v9 = vmul.f32 %v595_v0, %v595_v0  ;;  %s249_s24 = sshll.u32 %s525_s1, 4  ;;  %s250_s24 = int_to_ptr.vmem [resolvable:$true] %s249_s24 }
  0x2a   :  { %v63_v10 = vmul.f32 %v597_v1, %v597_v1  ;;  %vm52_vm0 = vcmp.ge.f32.partialorder %v595_v0, 0.0  ;;  %vm62_vm1 = vcmp.ge.f32.partialorder %v597_v1, 0.0  ;;  %vm68_vm2 = vcmp.lt.f32.partialorder %v597_v1, 0.0  ;;  %s378_s25 = scalar_lea.vmem %s250_s24, 128  ;;  %p383_p3 = scmp.lt.s32.totalorder %s250_s24, %s250_s24 }
  0x2b   :  { %314 = vpow2.f32 %v47_v2  ;;  %v297_v11 = vadd.f32 -0.5, %v53_v9  ;;  %v614_v16 = vmul.f32 2.0, %v595_v0  ;;  %v79_v20 = vmul.f32 2.0, %v597_v1  ;;  %vm69_vm3 = vmor %vm68_vm2, %vm52_vm0  ;;  %p379_p2 = scmp.ne.s32.totalorder %s250_s24, %s378_s25  ;;  %p384_p4 = scmp.lt.s32.totalorder %s378_s25, %s378_s25 }
  0x2c   :  { %316 = vpow2.f32 %v57_v3  ;;  %v299_v13 = vadd.f32 -0.5, %v63_v10  ;;  %vm640_vm5 = vmxor %vm69_vm3, %vm524_vm4 }
  0x2d   :  { %p385_p5 = por %p384_p4, %p383_p3 }
  0x2f   :  { %p386_p6 = pnand %p385_p5, %p379_p2 }
  0x35   :  { %v315_v4 = vpop.eup %314 }
  0x36   :  { %v317_v5 = vpop.eup %316  ;;  %v49_v6 = vadd.f32 1.0, %v315_v4 }
  0x37   :  { %v59_v7 = vadd.f32 1.0, %v317_v5 }
  0x38   :  { %318 = vrcp.f32 %v49_v6 }
  0x39   :  { %320 = vrcp.f32 %v59_v7 }
  0x3a   :  { %322 = vrcp.f32 %v603_v8 }
  0x42   :  { %v319_v12 = vpop.eup %318 }
  0x43   :  { %v321_v14 = vpop.eup %320  ;;  %v298_v15 = vadd.f32 -1.0, %v319_v12  ;;  %v75_v17 = vsub.f32 0.0, %v319_v12  ;;  %v76_v18 = vsub.f32 1.0, %v319_v12 }
  0x44   :  { %v300_v19 = vadd.f32 -1.0, %v321_v14  ;;  %v80_v21 = vsub.f32 0.0, %v321_v14  ;;  %v81_v22 = vsub.f32 1.0, %v321_v14  ;;  %v323_v25 = vpop.eup %322 }
  0x45   :  { %v619_v23 = vsel %vm52_vm0, %v297_v11, %v298_v15  ;;  %v77_v24 = vmul.f32 %v76_v18, %v75_v17 }
  0x46   :  { %v623_v26 = vsel %vm62_vm1, %v299_v13, %v300_v19  ;;  %v82_v27 = vmul.f32 %v81_v22, %v80_v21  ;;  %v112_v47 = vadd.f32 0.5, %v619_v23 }
  0x47   :  { %v71_v28 = vsub.f32 %v623_v26, %v619_v23  ;;  %v634_v29 = vsel %vm52_vm0, %v614_v16, %v77_v24  ;;  %v106_v46 = vadd.f32 0.5, %v623_v26 }
  0x48   :  { %v638_v30 = vsel %vm62_vm1, %v79_v20, %v82_v27  ;;  %v147_v34 = vmul.f32 %v634_v29, %v595_v0  ;;  %324 = vrcp.f32 %v634_v29  ;;  %v167_v54 = vmul.f32 %v634_v29, %v634_v29 }
  0x49   :  { %v644_v32 = vmul.f32 %v323_v25, %v71_v28  ;;  %v126_v33 = vmul.f32 %v638_v30, %v597_v1  ;;  %v129_v42 = vmul.f32 %v638_v30, %v595_v0  ;;  %v107_v58 = vand.u32 2147483647, %v106_v46 }
  0x4a   :  { %v148_v39 = vsub.f32 %v619_v23, %v147_v34  ;;  %v113_v59 = vand.u32 2147483647, %v112_v47 }
  0x4b   :  { %vm84_vm6 = vcmp.gt.f32.partialorder %v644_v32, 0.0  ;;  %vm86_vm7 = vcmp.lt.f32.partialorder %v644_v32, 0.0  ;;  %vm92_vm8 = vcmp.lt.f32.partialorder %v644_v32, %v634_v29  ;;  %vm94_vm10 = vcmp.ge.f32.partialorder %v644_v32, %v634_v29 }
  0x4c   :  { %vm657_vm9 = vmand %vm84_vm6, %vm640_vm5  ;;  %v98_v36 = vmul.f32 %v644_v32, %v597_v1  ;;  %326 = vrcp.f32 %v644_v32  ;;  %v127_v38 = vsub.f32 %v623_v26, %v126_v33  ;;  %v150_v44 = vsub.f32 0.0, %v148_v39 }
  0x4d   :  { %vm670_vm11 = vmand %vm86_vm7, %vm640_vm5  ;;  %v108_v6 = vmul.f32 0.5, %v107_v58  ;;  %v114_v7 = vmul.f32 0.5, %v113_v59  ;;  %v88_v9 = vsel %vm52_vm0, %v644_v32, 0.0  ;;  %v145_v35 = vmul.f32 %v113_v59, %v603_v8 }
  0x4e   :  { %vm678_vm12 = vmand %vm92_vm8, %vm670_vm11  ;;  %v99_v41 = vsub.f32 %v623_v26, %v98_v36  ;;  %v302_v53 = vadd.f32 -0.5, %v150_v44  ;;  %v91_v17 = vsel %vm68_vm2, %v634_v29, %v88_v9  ;;  %v89_v36 = vsel %vm52_vm0, %v614_v16, 0.0 }
  0x4f   :  { %vm687_vm13 = vmand %vm94_vm10, %vm670_vm11 }
  0x50   :  { %vm695_vm14 = vmor %vm657_vm9, %vm687_vm13 }
  0x51   :  { %v100_v48 = vsel %vm695_vm14, %v99_v41, 0.0  ;;  %v128_v49 = vsel %vm695_vm14, %v127_v38, 0.0  ;;  %v97_v34 = vsel %vm695_vm14, %v644_v32, %v91_v17 }
  0x52   :  { %v101_v50 = vsub.f32 0.0, %v100_v48  ;;  %v707_v51 = vsel %vm678_vm12, %v148_v39, %v128_v49  ;;  %v130_v52 = vadd.f32 %v129_v42, %v128_v49  ;;  %v325_v56 = vpop.eup %324  ;;  %v143_v48 = vsel %vm678_vm12, %v634_v29, %v97_v34 }
  0x53   :  { %v168_v55 = vadd.f32 0.5, %v707_v51  ;;  %v153_v3 = vmul.f32 %v325_v56, %v302_v53  ;;  %v90_v49 = vsel %vm68_vm2, %v644_v32, %v89_v36  ;;  %v146_v53 = vsel %vm678_vm12, %v145_v35, 0.0 }
  0x54   :  { %v301_v57 = vadd.f32 -0.5, %v101_v50  ;;  %v131_v60 = vsel %vm695_vm14, %v130_v52, 0.0 }
  0x55   :  { %v169_v61 = vmul.f32 4.0, %v168_v55  ;;  %v132_v62 = vsub.f32 %v131_v60, %v619_v23 }
  0x56   :  { %v327_v63 = vpop.eup %326 }
  0x57   :  { %v104_v2 = vmul.f32 %v327_v63, %v301_v57  ;;  %v170_v4 = vadd.f32 %v169_v61, %v167_v54  ;;  %v133_v5 = vand.u32 2147483647, %v132_v62  ;;  %v144_v61 = vsel %vm687_vm13, %v644_v32, %v143_v48 }
  0x59   :  { %v105_v10 = vsel %vm695_vm14, %v104_v2, 0.0  ;;  %328 = vrsqrt.f32 %v170_v4  ;;  %v134_v18 = vmul.f32 0.5, %v133_v5  ;;  %vm173_vm15 = vcmp.eq.f32.partialorder %v170_v4, inf }
  0x5a   :  { %v109_v11 = vsub.f32 %v597_v1, %v105_v10  ;;  %v115_v12 = vsub.f32 %v595_v0, %v105_v10  ;;  %v118_v13 = vsub.f32 %v105_v10, %v595_v0  ;;  %v121_v14 = vsub.f32 %v105_v10, %v597_v1 }
  0x5b   :  { %v154_v15 = vsel %vm678_vm12, %v153_v3, %v105_v10  ;;  %v135_v27 = vmul.f32 %v134_v18, %v603_v8  ;;  %v176_v52 = vand.u32 2147483648, %v170_v4  ;;  %vm175_vm3 = vcmp.eq.f32.partialorder %v170_v4, 0.0 }
  0x5c   :  { %v110_v19 = vmul.f32 %v109_v11, %v108_v6  ;;  %v116_v20 = vmul.f32 %v115_v12, %v114_v7  ;;  %v119_v21 = vmul.f32 %v118_v13, %v114_v7  ;;  %v122_v22 = vmul.f32 %v121_v14, %v108_v6 }
  0x5d   :  { %v155_v24 = vsub.f32 %v154_v15, %v595_v0  ;;  %v158_v25 = vsub.f32 %v154_v15, %v597_v1  ;;  %v136_v46 = vsel %vm695_vm14, %v135_v27, 0.0 }
  0x5e   :  { %v111_v28 = vsel %vm657_vm9, %v110_v19, 0.0  ;;  %v117_v33 = vsel %vm657_vm9, %v116_v20, 0.0 }
  0x5f   :  { %v120_v38 = vsel %vm687_vm13, %v119_v21, %v111_v28  ;;  %v123_v39 = vsel %vm687_vm13, %v122_v22, %v117_v33  ;;  %v156_v41 = vmul.f32 %v155_v24, %v114_v7  ;;  %v159_v42 = vmul.f32 %v158_v25, %v108_v6 }
  0x60   :  { %v124_v44 = vsub.f32 %v120_v38, %v123_v39 }
  0x61   :  { %v160_v47 = vsel %vm678_vm12, %v159_v42, %v123_v39 }
  0x62   :  { %v125_v16 = vsel %vm695_vm14, %v124_v44, %v120_v38 }
  0x63   :  { %v329_v50 = vpop.eup %328  ;;  %v157_v8 = vsel %vm678_vm12, %v156_v41, %v125_v16  ;;  %vm137_vm0 = vcmp.lt.f32.partialorder %v125_v16, %v136_v46  ;;  %vm139_vm1 = vcmp.le.f32.partialorder %v136_v46, %v125_v16 }
  0x64   :  { %v161_v54 = vsub.f32 %v157_v8, %v160_v47  ;;  %v172_v55 = vmul.f32 %v329_v50, %v170_v4  ;;  %vm765_vm4 = vmand %vm695_vm14, %vm137_vm0 }
  0x65   :  { %vm771_vm2 = vmand %vm695_vm14, %vm139_vm1  ;;  %v141_v58 = vsel %vm765_vm4, 0.0, %v90_v49 }
  0x66   :  { %v162_v59 = vsel %vm678_vm12, %v161_v54, %v125_v16  ;;  %v174_v60 = vsel %vm173_vm15, %v170_v4, %v172_v55  ;;  %v142_v62 = vsel %vm771_vm2, %v638_v30, %v141_v58 }
  0x67   :  { %vm163_vm6 = vcmp.lt.f32.partialorder %v162_v59, %v146_v53  ;;  %v177_v45 = vsel %vm175_vm3, %v176_v52, %v174_v60  ;;  %vm165_vm8 = vcmp.le.f32.partialorder %v146_v53, %v162_v59 }
  0x68   :  { %vm788_vm9 = vmand %vm678_vm12, %vm163_vm6  ;;  %v178_v2 = vadd.f32 %v177_v45, %v634_v29 }
  0x69   :  { %vm166_vm10 = vmand %vm678_vm12, %vm165_vm8 }
  0x6a   :  { %v179_v43 = vmul.f32 0.5, %v178_v2  ;;  %v194_v3 = vsel %vm166_vm10, 0.0, %v144_v61  ;;  %v193_v4 = vsel %vm166_vm10, 0.0, %v142_v62 }
  0x6b   :  { %210 = vst [vmem:[#allocation11] sm:$0xff] %v194_v3  ;;  %209 = vst [vmem:[#allocation10] sm:$0xff] %v193_v4 }
  0x6c   :  { %v180_v30 = vsel %vm788_vm9, %v179_v43, 0.0 }
  0x6d   :  { %389 = shalt.err (!%p386_p6)
}
  0x6e   :  { %s390_s28 = scalar_lea.hbm %s929_s5, 128 }
  0x6f   :  { %p391_p7 = scmp.ne.s32.totalorder %s929_s5, %s390_s28  ;;  %p394_p8 = scmp.lt.u32.totalorder %s390_s28, %s929_s5 }
  0x71   :  { %p396_p9 = pnand %p394_p8, %p391_p7 }
  0x73   :  { %399 = shalt.err (!%p396_p9)
}
  0x74   :  { %252 = dma.vmem_to_hbm [thread:$0]  %s250_s24, 128, %s929_s5, [#allocation12]   ;;  %v182_v29 = vmul.f32 1.442695, %v180_v30  ;;  %v188_v6 = vmul.f32 %v180_v30, %v180_v30  ;;  %v181_v7 = vsel %vm788_vm9, %v179_v43, %v597_v1  ;;  %vm187_vm12 = vcmp.ge.f32.partialorder %v180_v30, 0.0 }
  0x75   :  { %v199_v10 = vsel %vm86_vm7, %v595_v0, %v181_v7  ;;  %v198_v11 = vsel %vm86_vm7, %v181_v7, %v595_v0  ;;  %s526_s5 = smov [#allocation8]   ;;  %s527_s13 = smov [#allocation7]  }
  0x76   :  { %330 = vpow2.f32 %v182_v29  ;;  %v303_v9 = vadd.f32 -0.5, %v188_v6  ;;  %s229_s12 = sshll.u32 %s526_s5, 4  ;;  %v200_v14 = vmul.f32 %v199_v10, %v194_v3  ;;  %v202_v15 = vmul.f32 %v198_v11, %v193_v4  ;;  %s219_s14 = sshll.u32 %s527_s13, 4  ;;  %s230_s12 = int_to_ptr.vmem [resolvable:$true] %s229_s12  ;;  %s827_s14 = int_to_ptr.vmem [resolvable:$true] %s219_s14 }
  0x77   :  { %s528_s15 = smov [#allocation10]   ;;  %s529_s17 = smov [#allocation13]  }
  0x78   :  { %s239_s16 = sshll.u32 %s528_s15, 4  ;;  %s259_s18 = sshll.u32 %s529_s17, 4  ;;  %s829_s16 = int_to_ptr.vmem [resolvable:$true] %s239_s16  ;;  %s833_s18 = int_to_ptr.vmem [resolvable:$true] %s259_s18 }
  0x79   :  { %s530_s19 = smov [#allocation14]   ;;  %s400_s21 = scalar_lea.vmem %s230_s12, 128 }
  0x7a   :  { %s269_s20 = sshll.u32 %s530_s19, 4  ;;  %p401_p10 = scmp.ne.s32.totalorder %s230_s12, %s400_s21  ;;  %s835_s20 = int_to_ptr.vmem [resolvable:$true] %s269_s20 }
  0x7b   :  { %p405_p11 = scmp.lt.s32.totalorder %s230_s12, %s230_s12  ;;  %p406_p12 = scmp.lt.s32.totalorder %s400_s21, %s400_s21 }
  0x7d   :  { %p407_p13 = por %p406_p12, %p405_p11 }
  0x7f   :  { %p408_p0 = pnand %p407_p13, %p401_p10 }
  0x80   :  { %v331_v40 = vpop.eup %330 }
  0x81   :  { %v184_v5 = vadd.f32 1.0, %v331_v40 }
  0x83   :  { %332 = vrcp.f32 %v184_v5 }
  0x8d   :  { %v333_v12 = vpop.eup %332 }
  0x8e   :  { %v304_v13 = vadd.f32 -1.0, %v333_v12 }
  0x90   :  { %v191_v1 = vsel %vm187_vm12, %v303_v9, %v304_v13 }
  0x91   :  { %v192_v0 = vsel %vm788_vm9, %v191_v1, %v623_v26 }
  0x92   :  { %v196_v17 = vsel %vm86_vm7, %v619_v23, %v192_v0  ;;  %v195_v18 = vsel %vm86_vm7, %v192_v0, %v619_v23 }
  0x93   :  { %208 = vst [vmem:[#allocation8] sm:$0xff] %v196_v17  ;;  %v197_v19 = vsel %vm640_vm5, -0.5, %v195_v18  ;;  %v203_v20 = vsub.f32 %v195_v18, %v202_v15  ;;  %v201_v21 = vsub.f32 %v196_v17, %v200_v14 }
  0x94   :  { %207 = vst [vmem:[#allocation7] sm:$0xff] %v197_v19 }
  0x95   :  { %411 = shalt.err (!%p408_p0)
}
  0x96   :  { %s412_s23 = scalar_lea.hbm %s927_s3, 128 }
  0x97   :  { %p413_p1 = scmp.ne.s32.totalorder %s927_s3, %s412_s23  ;;  %p416_p2 = scmp.lt.u32.totalorder %s412_s23, %s927_s3 }
  0x99   :  { %p418_p3 = pnand %p416_p2, %p413_p1 }
  0x9b   :  { %421 = shalt.err (!%p418_p3)
}
  0x9c   :  { %232 = dma.vmem_to_hbm [thread:$0]  %s230_s12, 128, %s927_s3, [#allocation9]   ;;  %v204_v23 = vsel %vm670_vm11, -0.5, %v203_v20  ;;  %212 = vst [vmem:[#allocation14] sm:$0xff] %v201_v21 }
  0x9d   :  { %s422_s29 = scalar_lea.vmem %s827_s14, 128  ;;  %p427_p5 = scmp.lt.s32.totalorder %s827_s14, %s827_s14 }
  0x9e   :  { %p423_p4 = scmp.ne.s32.totalorder %s827_s14, %s422_s29  ;;  %p428_p6 = scmp.lt.s32.totalorder %s422_s29, %s422_s29 }
  0xa0   :  { %p429_p7 = por %p428_p6, %p427_p5 }
  0xa2   :  { %p430_p8 = pnand %p429_p7, %p423_p4 }
  0xa4   :  { %433 = shalt.err (!%p430_p8)
}
  0xa5   :  { %s434_s9 = scalar_lea.hbm %s926_s2, 128 }
  0xa6   :  { %p435_p9 = scmp.ne.s32.totalorder %s926_s2, %s434_s9  ;;  %p438_p10 = scmp.lt.u32.totalorder %s434_s9, %s926_s2 }
  0xa8   :  { %p440_p11 = pnand %p438_p10, %p435_p9 }
  0xaa   :  { %443 = shalt.err (!%p440_p11)
}
  0xab   :  { %222 = dma.vmem_to_hbm [thread:$0]  %s827_s14, 128, %s926_s2, [#allocation4]   ;;  %v205_v26 = vsel %vm765_vm4, -0.5, %v204_v23 }
  0xac   :  { %s444_s15 = scalar_lea.vmem %s829_s16, 128  ;;  %p449_p13 = scmp.lt.s32.totalorder %s829_s16, %s829_s16 }
  0xad   :  { %p445_p12 = scmp.ne.s32.totalorder %s829_s16, %s444_s15  ;;  %p450_p0 = scmp.lt.s32.totalorder %s444_s15, %s444_s15 }
  0xaf   :  { %p451_p1 = por %p450_p0, %p449_p13 }
  0xb1   :  { %p452_p2 = pnand %p451_p1, %p445_p12 }
  0xb3   :  { %455 = shalt.err (!%p452_p2)
}
  0xb4   :  { %s456_s21 = scalar_lea.hbm %s928_s4, 128 }
  0xb5   :  { %p457_p3 = scmp.ne.s32.totalorder %s928_s4, %s456_s21  ;;  %p460_p4 = scmp.lt.u32.totalorder %s456_s21, %s928_s4 }
  0xb7   :  { %p462_p5 = pnand %p460_p4, %p457_p3 }
  0xb9   :  { %465 = shalt.err (!%p462_p5)
}
  0xba   :  { %242 = dma.vmem_to_hbm [thread:$0]  %s829_s16, 128, %s928_s4, [#allocation9]   ;;  %v206_v31 = vsel %vm771_vm2, %v707_v51, %v205_v26 }
  0xbb   :  { %s466_s24 = scalar_lea.vmem %s835_s20, 128  ;;  %p471_p7 = scmp.lt.s32.totalorder %s835_s20, %s835_s20 }
  0xbc   :  { %p467_p6 = scmp.ne.s32.totalorder %s835_s20, %s466_s24  ;;  %p472_p8 = scmp.lt.s32.totalorder %s466_s24, %s466_s24 }
  0xbe   :  { %p473_p9 = por %p472_p8, %p471_p7 }
  0xc0   :  { %p474_p10 = pnand %p473_p9, %p467_p6 }
  0xc2   :  { %477 = shalt.err (!%p474_p10)
}
  0xc3   :  { %s478_s27 = scalar_lea.hbm %s931_s7, 128 }
  0xc4   :  { %p479_p11 = scmp.ne.s32.totalorder %s931_s7, %s478_s27  ;;  %p482_p12 = scmp.lt.u32.totalorder %s478_s27, %s931_s7 }
  0xc6   :  { %p484_p13 = pnand %p482_p12, %p479_p11 }
  0xc8   :  { %487 = shalt.err (!%p484_p13)
}
  0xc9   :  { %272 = dma.vmem_to_hbm [thread:$0]  %s835_s20, 128, %s931_s7, [#allocation15]   ;;  %211 = vst [vmem:[#allocation13] sm:$0xff] %v206_v31 }
  0xca   :  { %s488_s9 = scalar_lea.vmem %s833_s18, 128  ;;  %p493_p1 = scmp.lt.s32.totalorder %s833_s18, %s833_s18 }
  0xcb   :  { %p489_p0 = scmp.ne.s32.totalorder %s833_s18, %s488_s9  ;;  %p494_p2 = scmp.lt.s32.totalorder %s488_s9, %s488_s9 }
  0xcd   :  { %p495_p3 = por %p494_p2, %p493_p1 }
  0xcf   :  { %p496_p4 = pnand %p495_p3, %p489_p0 }
  0xd1   :  { %499 = shalt.err (!%p496_p4)
}
  0xd2   :  { %s500_s3 = scalar_lea.hbm %s930_s6, 128 }
  0xd3   :  { %p501_p5 = scmp.ne.s32.totalorder %s930_s6, %s500_s3  ;;  %p504_p6 = scmp.lt.u32.totalorder %s500_s3, %s930_s6 }
  0xd5   :  { %p506_p7 = pnand %p504_p6, %p501_p5 }
  0xd7   :  { %509 = shalt.err (!%p506_p7)
}
  0xd8   :  { %262 = dma.vmem_to_hbm [thread:$0]  %s833_s18, 128, %s930_s6, [#allocation12]  }
  0xd9   :  { %514 = dma.done.wait [#allocation4], 128  }
  0xda   :  { %515 = vsyncadd [#allocation4], 4294967168 }
  0xdb   :  { %516 = dma.done.wait [#allocation9], 256  }
  0xdc   :  { %517 = vsyncadd [#allocation9], 4294967040 }
  0xdd   :  { %518 = dma.done.wait [#allocation12], 256  }
  0xde   :  { %519 = vsyncadd [#allocation12], 4294967040 }
  0xdf   :  { %520 = dma.done.wait [#allocation15], 128  }
  0xe0   :  { %521 = vsyncadd [#allocation15], 4294967168 }
  0xe1   :  { %291 = vsyncpa [#allocation3], 1 }
  0xe2   :  { %292 = vsyncpa [#allocation6], 1 }
  0xe3   :  { %293 = vsyncpa [#allocation4], 1 }
  0xe4   :  { %294 = vsyncpa [#allocation9], 1 }
  0xe5   :  { %295 = vsyncpa [#allocation12], 1 }
  0xe6   :  { %296 = vsyncpa [#allocation15], 1 }

</bundles_post_ra>
